<compile_context>
chip_gen: v7x
topology: tpu7x:2x2x1
jax: 0.10.0
libtpu: 0.0.40
codegen_flags: <defaults>
</compile_context>

<pallas_src>
import functools

import jax
import jax.numpy as jnp
from jax.experimental import pallas as pl
from jax.experimental.pallas import tpu as pltpu


def _conv_branch_kernel(patch_ref, w_ref, gamma_ref, beta_ref, out_ref,
                        sum_ref, sumsq_ref, *,
                        h_out, w_spatial, hid_p, n_total, eps):
    """Grid = (2, B).  Axis 0: pass (0 = stats, 1 = normalize+pool), axis 1: batch."""
    p = pl.program_id(0)
    b = pl.program_id(1)

    @pl.when(jnp.logical_and(p == 0, b == 0))
    def _init():
        sum_ref[...] = jnp.zeros_like(sum_ref)
        sumsq_ref[...] = jnp.zeros_like(sumsq_ref)

    # Conv2d((K,1), dilation=(d,1), bias=False) + ReLU as one matmul over the
    # folded K*Cin contraction.  bf16 operands, f32 accumulation.
    # (Cout, K*Cin) @ (K*Cin, H_out*W) -> spatial on the lane axis (lane-dense).
    y = jnp.dot(w_ref[...], patch_ref[0], preferred_element_type=jnp.float32)
    y = jnp.maximum(y, 0.0)                                     # (Cout, H_out*W)

    @pl.when(p == 0)
    def _stats():
        # Single-pass BatchNorm statistics: per-channel sum and sum-of-squares.
        sum_ref[...] += jnp.sum(y, axis=1, keepdims=True)        # (Cout, 1)
        sumsq_ref[...] += jnp.sum(y * y, axis=1, keepdims=True)  # (Cout, 1)
        out_ref[...] = jnp.zeros_like(out_ref)                   # deterministic init

    @pl.when(p == 1)
    def _apply():
        inv_n = 1.0 / n_total
        mean = sum_ref[...] * inv_n                              # (Cout, 1)
        var = jnp.maximum(sumsq_ref[...] * inv_n - mean * mean, 0.0)
        scale = gamma_ref[...] * jax.lax.rsqrt(var + eps)        # (Cout, 1)
        shift = beta_ref[...] - mean * scale
        yn = y * scale + shift                                   # lane-dense elementwise

        # AdaptiveMaxPool2d((hidP, m)); W already equals m -> identity on W.
        y3 = yn.reshape(yn.shape[0], h_out, w_spatial)           # (Cout, H_out, W)
        pooled = []
        for i in range(hid_p):
            s = (i * h_out) // hid_p
            e = -(-((i + 1) * h_out) // hid_p)                   # ceil
            pooled.append(jnp.max(y3[:, s:e, :], axis=1))        # (Cout, W)
        out_ref[0] = jnp.concatenate(pooled, axis=-1)            # one (Cout, hidP*W) store


def conv_branch_forward(x_nchw, conv_weight, gamma, beta, *,
                        m, kernel_size, dilation, hid_p, is_pool=True, eps=1e-5):
    """Pallas implementation of ConvBranch.forward.

    x_nchw:      (B, C_in, T, m)      PyTorch NCHW input
    conv_weight: (C_out, C_in, K, 1)  PyTorch Conv2d weight (no bias)
    gamma, beta: (C_out,)             BatchNorm2d affine parameters
    returns:     (B, C_out * hidP, m) (or (B, C_out * T_out, m) when isPool=False)
    """
    B, Cin, H, W = x_nchw.shape
    Cout = conv_weight.shape[0]
    K = kernel_size
    H_out = H - dilation * (K - 1)
    assert W == m, "last spatial dim must equal m"
    if not is_pool:
        # Adaptive pool with output size == input size is the identity.
        hid_p = H_out

    HW = H_out * W
    KC = K * Cin

    # Wrapper-side im2col: (B, K*Cin, H_out*W).  NCHW already has channels ahead
    # of spatial, so this is slices + a contiguous reshape (no transpose of x).
    taps = [x_nchw[:, :, k * dilation:k * dilation + H_out, :] for k in range(K)]
    patches = jnp.stack(taps, axis=1).reshape(B, KC, HW).astype(jnp.bfloat16)

    # Conv weight (Cout, Cin, K, 1) -> (Cout, K*Cin) matching the (k, cin) order.
    w2 = jnp.transpose(conv_weight[:, :, :, 0], (0, 2, 1)).reshape(Cout, KC)
    w2 = w2.astype(jnp.bfloat16)

    gamma2 = gamma.reshape(Cout, 1).astype(jnp.float32)
    beta2 = beta.reshape(Cout, 1).astype(jnp.float32)

    kernel = functools.partial(
        _conv_branch_kernel, h_out=H_out, w_spatial=W, hid_p=hid_p,
        n_total=float(B * H_out * W), eps=float(eps))

    out = pl.pallas_call(
        kernel,
        out_shape=jax.ShapeDtypeStruct((B, Cout, hid_p * W), jnp.float32),
        grid_spec=pltpu.PrefetchScalarGridSpec(
            num_scalar_prefetch=0,
            grid=(2, B),
            in_specs=[
                pl.BlockSpec((1, KC, HW), lambda p, b: (b, 0, 0)),   # im2col patches
                pl.BlockSpec((Cout, KC), lambda p, b: (0, 0)),       # weights
                pl.BlockSpec((Cout, 1), lambda p, b: (0, 0)),        # gamma
                pl.BlockSpec((Cout, 1), lambda p, b: (0, 0)),        # beta
            ],
            out_specs=pl.BlockSpec((1, Cout, hid_p * W), lambda p, b: (b, 0, 0)),
            scratch_shapes=[pltpu.VMEM((Cout, 1), jnp.float32),      # sum(y)
                            pltpu.VMEM((Cout, 1), jnp.float32)],     # sum(y*y)
        ),
        compiler_params=pltpu.CompilerParams(
            dimension_semantics=("arbitrary", "arbitrary")),
    )(patches, w2, gamma2, beta2)

    # (B, Cout, hidP*W) -> (B, Cout*hidP, m): same element order as the PyTorch
    # (B, Cout, hidP, m).view(B, -1, m); pure reshape, no transpose.
    return out.reshape(B, Cout * hid_p, m)


def _reference(x, weight, gamma, beta, *, m, kernel_size, dilation, hid_p, eps=1e-5):
    """Pure-JAX mirror of the PyTorch forward (NCHW).  Conv operands are rounded
    to bf16 (matching the kernel's MXU inputs) but accumulated in f32."""
    xb = x.astype(jnp.bfloat16).astype(jnp.float32)
    wb = weight.astype(jnp.bfloat16).astype(jnp.float32)
    y = jax.lax.conv_general_dilated(
        xb, wb, window_strides=(1, 1), padding="VALID",
        rhs_dilation=(dilation, 1),
        dimension_numbers=("NCHW", "OIHW", "NCHW"),
        precision=jax.lax.Precision.HIGHEST)
    y = jnp.maximum(y, 0.0)
    mean = jnp.mean(y, axis=(0, 2, 3), keepdims=True)
    var = jnp.mean((y - mean) ** 2, axis=(0, 2, 3), keepdims=True)
    y = (y - mean) / jnp.sqrt(var + eps)
    y = y * gamma[None, :, None, None] + beta[None, :, None, None]
    B, Cout, H_out, W = y.shape
    rows = []
    for i in range(hid_p):
        s = (i * H_out) // hid_p
        e = -(-((i + 1) * H_out) // hid_p)
        rows.append(jnp.max(y[:, :, s:e, :], axis=2))
    y = jnp.stack(rows, axis=2)                      # (B, Cout, hidP, m)
    return y.reshape(B, Cout * hid_p, m)


if __name__ == "__main__":
    B, Cin, Cout = 2, 4, 8
    H, m = 16, 8            # input is (B, Cin, T=H, m)
    K, dil, hidP = 3, 2, 2  # ConvBranch(m, Cin, Cout, kernel_size=3, dilation_factor=2, hidP=2)

    key = jax.random.PRNGKey(0)
    kx, kw, kg, kb = jax.random.split(key, 4)
    x = jax.random.normal(kx, (B, Cin, H, m), jnp.float32)

    # Deterministic synthetic parameters (shapes follow nn.Conv2d / nn.BatchNorm2d).
    fan_in = Cin * K * 1
    bound = 1.0 / (fan_in ** 0.5)
    weight = jax.random.uniform(kw, (Cout, Cin, K, 1), jnp.float32, -bound, bound)
    gamma = 1.0 + 0.1 * jax.random.normal(kg, (Cout,), jnp.float32)
    beta = 0.1 * jax.random.normal(kb, (Cout,), jnp.float32)

    out = conv_branch_forward(x, weight, gamma, beta, m=m, kernel_size=K,
                              dilation=dil, hid_p=hidP, is_pool=True)
    out = jax.block_until_ready(out)

    ref = _reference(x, weight, gamma, beta, m=m, kernel_size=K,
                     dilation=dil, hid_p=hidP)
    assert out.shape == (B, Cout * hidP, m), out.shape
    assert jnp.allclose(out, ref, atol=1e-3, rtol=1e-3), \
        f"max abs diff {float(jnp.max(jnp.abs(out - ref)))}"
    print("KERNEL_OK")
</pallas_src>

<mosaic_0001>
module attributes {stable_mosaic.version = 11 : i64} {
  func.func @_conv_branch_kernel(%arg0: i32, %arg1: i32, %arg2: memref<1x12x96xbf16, #tpu.memory_space<vmem>>, %arg3: memref<8x12xbf16, #tpu.memory_space<vmem>>, %arg4: memref<8x1xf32, #tpu.memory_space<vmem>>, %arg5: memref<8x1xf32, #tpu.memory_space<vmem>>, %arg6: memref<1x8x16xf32, #tpu.memory_space<vmem>>, %arg7: memref<8x1xf32, #tpu.memory_space<vmem>>, %arg8: memref<8x1xf32, #tpu.memory_space<vmem>>) attributes {dimension_semantics = [#tpu.dimension_semantics<arbitrary>, #tpu.dimension_semantics<arbitrary>], iteration_bounds = array<i64: 2, 2>, scalar_prefetch = 0 : i64, scratch_operands = 2 : i64, tpu.core_type = #tpu.core_type<tc>, window_params = [{transform_indices = @transform_0, window_bounds = array<i64: 1, 12, 96>}, {pipeline_mode = #tpu.pipeline_mode<synchronous>, transform_indices = @transform_1, window_bounds = array<i64: 8, 12>}, {pipeline_mode = #tpu.pipeline_mode<synchronous>, transform_indices = @transform_2, window_bounds = array<i64: 8, 1>}, {pipeline_mode = #tpu.pipeline_mode<synchronous>, transform_indices = @transform_3, window_bounds = array<i64: 8, 1>}, {transform_indices = @transform_4, window_bounds = array<i64: 1, 8, 16>}]} {
    %c0_i32 = arith.constant 0 : i32
    %0 = arith.cmpi eq, %arg0, %c0_i32 : i32
    %c0_i32_0 = arith.constant 0 : i32
    %1 = arith.cmpi eq, %arg1, %c0_i32_0 : i32
    %2 = arith.andi %0, %1 : i1
    %3 = arith.extui %2 : i1 to i32
    %c0_i32_1 = arith.constant 0 : i32
    %4 = arith.cmpi ne, %3, %c0_i32_1 : i32
    scf.if %4 {
      %cst_10 = arith.constant 0.000000e+00 : f32
      %17 = vector.broadcast %cst_10 : f32 to vector<8x1xf32>
      %c0_11 = arith.constant 0 : index
      %c0_12 = arith.constant 0 : index
      %18 = vector.load %arg7[%c0_11, %c0_12] : memref<8x1xf32, #tpu.memory_space<vmem>>, vector<8x1xf32>
      tpu.vector_store %arg7[%c0_11, %c0_12], %17 {strides = array<i32>} : memref<8x1xf32, #tpu.memory_space<vmem>>, vector<8x1xf32>,
      %cst_13 = arith.constant 0.000000e+00 : f32
      %19 = vector.broadcast %cst_13 : f32 to vector<8x1xf32>
      %c0_14 = arith.constant 0 : index
      %c0_15 = arith.constant 0 : index
      %20 = vector.load %arg8[%c0_14, %c0_15] : memref<8x1xf32, #tpu.memory_space<vmem>>, vector<8x1xf32>
      tpu.vector_store %arg8[%c0_14, %c0_15], %19 {strides = array<i32>} : memref<8x1xf32, #tpu.memory_space<vmem>>, vector<8x1xf32>,
    } else {
    }
    %c0 = arith.constant 0 : index
    %c0_2 = arith.constant 0 : index
    %5 = vector.load %arg3[%c0, %c0_2] : memref<8x12xbf16, #tpu.memory_space<vmem>>, vector<8x12xbf16>
    %c0_3 = arith.constant 0 : index
    %c0_4 = arith.constant 0 : index
    %c0_5 = arith.constant 0 : index
    %6 = vector.load %arg2[%c0_3, %c0_4, %c0_5] : memref<1x12x96xbf16, #tpu.memory_space<vmem>>, vector<1x12x96xbf16>
    %7 = vector.shape_cast %6 : vector<1x12x96xbf16> to vector<12x96xbf16>
    %cst = arith.constant dense<0.000000e+00> : vector<8x96xf32>
    %8 = tpu.matmul %5, %7, %cst {dimension_numbers = #tpu.dot_dimension_numbers<[1], [0], [0], [1], [0, 0, 1, 1], [], []>} : vector<8x12xbf16>, vector<12x96xbf16>, vector<8x96xf32> -> vector<8x96xf32>
    %cst_6 = arith.constant 0.000000e+00 : f32
    %9 = vector.broadcast %cst_6 : f32 to vector<8x96xf32>
    %10 = arith.maximumf %8, %9 : vector<8x96xf32>
    %c0_i32_7 = arith.constant 0 : i32
    %11 = arith.cmpi eq, %arg0, %c0_i32_7 : i32
    %12 = arith.extui %11 : i1 to i32
    %c0_i32_8 = arith.constant 0 : i32
    %13 = arith.cmpi ne, %12, %c0_i32_8 : i32
    scf.if %13 {
      %c0_10 = arith.constant 0 : index
      %c0_11 = arith.constant 0 : index
      %17 = vector.load %arg7[%c0_10, %c0_11] : memref<8x1xf32, #tpu.memory_space<vmem>>, vector<8x1xf32>
      %cst_12 = arith.constant dense<0.000000e+00> : vector<8xf32>
      %18 = vector.multi_reduction <add>, %10, %cst_12 [1] : vector<8x96xf32> to vector<8xf32>
      %19 = vector.shape_cast %18 : vector<8xf32> to vector<8x1xf32>
      %20 = arith.addf %17, %19 : vector<8x1xf32>
      %c0_13 = arith.constant 0 : index
      %c0_14 = arith.constant 0 : index
      %21 = vector.load %arg7[%c0_13, %c0_14] : memref<8x1xf32, #tpu.memory_space<vmem>>, vector<8x1xf32>
      tpu.vector_store %arg7[%c0_13, %c0_14], %20 {strides = array<i32>} : memref<8x1xf32, #tpu.memory_space<vmem>>, vector<8x1xf32>,
      %c0_15 = arith.constant 0 : index
      %c0_16 = arith.constant 0 : index
      %22 = vector.load %arg8[%c0_15, %c0_16] : memref<8x1xf32, #tpu.memory_space<vmem>>, vector<8x1xf32>
      %23 = arith.mulf %10, %10 : vector<8x96xf32>
      %cst_17 = arith.constant dense<0.000000e+00> : vector<8xf32>
      %24 = vector.multi_reduction <add>, %23, %cst_17 [1] : vector<8x96xf32> to vector<8xf32>
      %25 = vector.shape_cast %24 : vector<8xf32> to vector<8x1xf32>
      %26 = arith.addf %22, %25 : vector<8x1xf32>
      %c0_18 = arith.constant 0 : index
      %c0_19 = arith.constant 0 : index
      %27 = vector.load %arg8[%c0_18, %c0_19] : memref<8x1xf32, #tpu.memory_space<vmem>>, vector<8x1xf32>
      tpu.vector_store %arg8[%c0_18, %c0_19], %26 {strides = array<i32>} : memref<8x1xf32, #tpu.memory_space<vmem>>, vector<8x1xf32>,
      %cst_20 = arith.constant 0.000000e+00 : f32
      %28 = vector.broadcast %cst_20 : f32 to vector<1x8x16xf32>
      %c0_21 = arith.constant 0 : index
      %c0_22 = arith.constant 0 : index
      %c0_23 = arith.constant 0 : index
      %29 = vector.load %arg6[%c0_21, %c0_22, %c0_23] : memref<1x8x16xf32, #tpu.memory_space<vmem>>, vector<1x8x16xf32>
      tpu.vector_store %arg6[%c0_21, %c0_22, %c0_23], %28 {strides = array<i32>} : memref<1x8x16xf32, #tpu.memory_space<vmem>>, vector<1x8x16xf32>,
    } else {
    }
    %c1_i32 = arith.constant 1 : i32
    %14 = arith.cmpi eq, %arg0, %c1_i32 : i32
    %15 = arith.extui %14 : i1 to i32
    %c0_i32_9 = arith.constant 0 : i32
    %16 = arith.cmpi ne, %15, %c0_i32_9 : i32
    scf.if %16 {
      %c0_10 = arith.constant 0 : index
      %c0_11 = arith.constant 0 : index
      %17 = vector.load %arg7[%c0_10, %c0_11] : memref<8x1xf32, #tpu.memory_space<vmem>>, vector<8x1xf32>
      %cst_12 = arith.constant 0.00520833349 : f32
      %18 = vector.broadcast %cst_12 : f32 to vector<8x1xf32>
      %19 = arith.mulf %17, %18 : vector<8x1xf32>
      %c0_13 = arith.constant 0 : index
      %c0_14 = arith.constant 0 : index
      %20 = vector.load %arg8[%c0_13, %c0_14] : memref<8x1xf32, #tpu.memory_space<vmem>>, vector<8x1xf32>
      %cst_15 = arith.constant 0.00520833349 : f32
      %21 = vector.broadcast %cst_15 : f32 to vector<8x1xf32>
      %22 = arith.mulf %20, %21 : vector<8x1xf32>
      %23 = arith.mulf %19, %19 : vector<8x1xf32>
      %24 = arith.subf %22, %23 : vector<8x1xf32>
      %cst_16 = arith.constant 0.000000e+00 : f32
      %25 = vector.broadcast %cst_16 : f32 to vector<8x1xf32>
      %26 = arith.maximumf %24, %25 : vector<8x1xf32>
      %c0_17 = arith.constant 0 : index
      %c0_18 = arith.constant 0 : index
      %27 = vector.load %arg4[%c0_17, %c0_18] : memref<8x1xf32, #tpu.memory_space<vmem>>, vector<8x1xf32>
      %cst_19 = arith.constant 9.99999974E-6 : f32
      %28 = vector.broadcast %cst_19 : f32 to vector<8x1xf32>
      %29 = arith.addf %26, %28 : vector<8x1xf32>
      %30 = math.rsqrt %29 : vector<8x1xf32>
      %31 = arith.mulf %27, %30 : vector<8x1xf32>
      %c0_20 = arith.constant 0 : index
      %c0_21 = arith.constant 0 : index
      %32 = vector.load %arg5[%c0_20, %c0_21] : memref<8x1xf32, #tpu.memory_space<vmem>>, vector<8x1xf32>
      %33 = arith.mulf %19, %31 : vector<8x1xf32>
      %34 = arith.subf %32, %33 : vector<8x1xf32>
      %35 = vector.broadcast %31 : vector<8x1xf32> to vector<8x96xf32>
      %36 = arith.mulf %10, %35 : vector<8x96xf32>
      %37 = vector.broadcast %34 : vector<8x1xf32> to vector<8x96xf32>
      %38 = arith.addf %36, %37 : vector<8x96xf32>
      %39 = vector.shape_cast %38 : vector<8x96xf32> to vector<8x12x8xf32>
      %40 = vector.extract_strided_slice %39 {offsets = [0, 0, 0], sizes = [8, 6, 8], strides = [1, 1, 1]} : vector<8x12x8xf32> to vector<8x6x8xf32>
      %cst_22 = arith.constant dense<0xFF800000> : vector<8x8xf32>
      %41 = vector.multi_reduction <maximumf>, %40, %cst_22 [1] : vector<8x6x8xf32> to vector<8x8xf32>
      %42 = vector.extract_strided_slice %39 {offsets = [0, 6, 0], sizes = [8, 6, 8], strides = [1, 1, 1]} : vector<8x12x8xf32> to vector<8x6x8xf32>
      %cst_23 = arith.constant dense<0xFF800000> : vector<8x8xf32>
      %43 = vector.multi_reduction <maximumf>, %42, %cst_23 [1] : vector<8x6x8xf32> to vector<8x8xf32>
      %44 = tpu.concatenate %41, %43 in 1 : vector<8x8xf32>, vector<8x8xf32> -> vector<8x16xf32>
      %c0_24 = arith.constant 0 : index
      %c0_25 = arith.constant 0 : index
      %c0_26 = arith.constant 0 : index
      %45 = vector.load %arg6[%c0_24, %c0_25, %c0_26] : memref<1x8x16xf32, #tpu.memory_space<vmem>>, vector<1x8x16xf32>
      %46 = vector.shape_cast %45 : vector<1x8x16xf32> to vector<8x16xf32>
      %47 = vector.shape_cast %44 : vector<8x16xf32> to vector<1x8x16xf32>
      tpu.vector_store %arg6[%c0_24, %c0_25, %c0_26], %47 {strides = array<i32>} : memref<1x8x16xf32, #tpu.memory_space<vmem>>, vector<1x8x16xf32>,
    } else {
    }
    return
  }
  func.func @transform_0(%arg0: i32, %arg1: i32) -> (i32, i32, i32) {
    %c0_i32 = arith.constant 0 : i32
    %c0_i32_0 = arith.constant 0 : i32
    %c0_i32_1 = arith.constant 0 : i32
    return %arg1, %c0_i32, %c0_i32_0 : i32, i32, i32
  }
  func.func @transform_1(%arg0: i32, %arg1: i32) -> (i32, i32) {
    %c0_i32 = arith.constant 0 : i32
    %c0_i32_0 = arith.constant 0 : i32
    %c0_i32_1 = arith.constant 0 : i32
    return %c0_i32, %c0_i32_0 : i32, i32
  }
  func.func @transform_2(%arg0: i32, %arg1: i32) -> (i32, i32) {
    %c0_i32 = arith.constant 0 : i32
    %c0_i32_0 = arith.constant 0 : i32
    %c0_i32_1 = arith.constant 0 : i32
    return %c0_i32, %c0_i32_0 : i32, i32
  }
  func.func @transform_3(%arg0: i32, %arg1: i32) -> (i32, i32) {
    %c0_i32 = arith.constant 0 : i32
    %c0_i32_0 = arith.constant 0 : i32
    %c0_i32_1 = arith.constant 0 : i32
    return %c0_i32, %c0_i32_0 : i32, i32
  }
  func.func @transform_4(%arg0: i32, %arg1: i32) -> (i32, i32, i32) {
    %c0_i32 = arith.constant 0 : i32
    %c0_i32_0 = arith.constant 0 : i32
    %c0_i32_1 = arith.constant 0 : i32
    return %arg1, %c0_i32, %c0_i32_0 : i32, i32, i32
  }
}

</mosaic_0001>

<bundles_post_ra>
// kernel: tpu_custom_call.1
= control target key start
LH: loop header
LB: loop body
LE: loop exit
PB: predicated region body
PF: predicated region fallthrough
CT: control target
= control target key end

     0   :  { %9 = vsyncpa [#allocation5], 0  ;;  %s1343_s0 = inlined_call_operand.vmem [shape: bf16[2,12,96], index: 0, kind: input, shape index: {}]   ;;  %s1344_s1 = inlined_call_operand.vmem [shape: bf16[8,12], index: 1, kind: input, shape index: {}]   ;;  %s1345_s2 = inlined_call_operand.vmem [shape: f32[8,1], index: 2, kind: input, shape index: {}]   ;;  %s1346_s3 = inlined_call_operand.vmem [shape: f32[8,1], index: 3, kind: input, shape index: {}]   ;;  %s1347_s4 = inlined_call_operand.hbm [shape: f32[2,8,16], index: 4, kind: output, shape index: {}]  }
   0x1   :  { %11 = vsyncpa [#allocation5 + $0x1], 0  ;;  %s1085_s15 = smov 0   ;;  %s1087_s16 = smov 0  }
   0x2   :  { %s1089_s17 = smov 0   ;;  %s1091_s18 = smov 0  }
   0x3   :  { %s1093_s19 = smov 0   ;;  %s1095_s20 = smov 0  }
   0x4   :  { %s1097_s21 = smov 0   ;;  %s1099_s22 = smov 0  }
   0x5 LB: > { %s823_s23 = sadd.s32 4294967295, %s1037_s22   ;;  %s824_s24 = sadd.s32 4294967294, %s1037_s22   ;;  %s1037_s22 = sphi %s1099_s22, %s17_s22   ;;  %s1033_s21 = sphi %s1097_s21, %s1356_s21   ;;  %s1029_s20 = sphi %s1095_s20, %s1355_s20   ;;  %s1025_s19 = sphi %s1093_s19, %s1354_s19   ;;  %s1021_s18 = sphi %s1091_s18, %s1353_s18   ;;  %s1017_s17 = sphi %s1089_s17, %s1352_s17   ;;  %s1013_s16 = sphi %s1087_s16, %s1351_s16   ;;  %s1009_s15 = sphi %s1085_s15, %s1350_s15  }
   0x6   : > { %s26_s25 = sadd.s32 1, %s1029_s20  ;;  %s29_s26 = sadd.s32 1, %s1033_s21 }
   0x7   : > { %p27_p0 = scmp.ge.s32.totalorder %s26_s25, 2  ;;  %s125_s27 = sadd.s32 1, %s1017_s17 }
   0x8   : > { %p135_p1 = scmp.ne.s32.totalorder %s1017_s17, %s1013_s16  ;;  %p136_p2 = scmp.eq.s32.totalorder %s823_s23, 3 }
   0x9   : > { %s1358_s25 = smov (%p27_p0, %s26_s25), 0  ;;  %s1360_s26 = smov (!%p27_p0, %s29_s26), %s1033_s21 }
   0xa   : > { %s122_s28 = ssub.s32 %s1029_s20, %s1358_s25  ;;  %p1137_p3 = por %p136_p2, %p135_p1 }
   0xb   : > { %p31_p4 = scmp.ge.s32.totalorder %s1360_s26, 2  ;;  %p123_p5 = scmp.eq.s32.totalorder %s122_s28, 0 }
   0xc   : > { %p141_p6 = scmp.ne.s32.totalorder %s1013_s16, %s1009_s15  ;;  %p142_p7 = scmp.eq.s32.totalorder %s824_s24, 3 }
   0xd   : > { %s1362_s26 = smov (%p31_p4, %s1360_s26), 0  ;;  %p827_p9 = scmp.ge.s32.totalorder %s1037_s22, 1 }
   0xe   : > { %s1146_s30 = scalar_select %p123_p5, %s1017_s17, %s125_s27  }
   0xf   : > { %p1148_p8 = por %p142_p7, %p141_p6  ;;  %p177_p10 = scmp.lt.s32.totalorder %s1037_s22, 5 }
  0x11   : > { %p178_p11 = pnand %p827_p9, %p177_p10 }
  0x12   : > { %s200_s6 = sand.u32 (!%p178_p11), 1, %s1013_s16   ;;  %p203_p12 = scmp.lt.s32.totalorder (!%p178_p11), %s1021_s18, 1 }
  0x13   : > { %181 = sbr.rel (%p178_p11) target bundleno = 887 (0x377), region = 36  ;;  %s828_s7 = sshll.u32 (!%p178_p11), %s200_s6, 3 }
  0x14   : > { %p209_p13 = scmp.eq.s32.totalorder (!%p178_p11), %s1025_s19, 0  ;;  %p210_p0 = scmp.eq.s32.totalorder (!%p178_p11), %s1021_s18, 0 }
  0x15   : > { %s1164_s13 = scalar_lea.vmem (!%p178_p11), [#allocation4], %s828_s7 }
  0x16   : > { %p211_p1 = pnand (!%p178_p11), %p210_p0, %p209_p13 }
  0x1a   : > { %s204_s8 = scalar_select %p203_p12, %s1021_s18, 1 }
  0x1b   : > { %214 = sbr.rel (%p211_p1) target bundleno = 34 (0x22), region = 40  ;;  %vm215_vm0 = vcmask (!%p211_p1), 7168   ;;  %v1039_v0 = vmov (!%p211_p1), 0.0  }
  0x1c   : > { %s839_s9 = sshll.u32 %s204_s8, 3  ;;  %216 = vst.msk [vmem:[#allocation2] sm:$0xff] (!%p211_p1), %vm215_vm0, %v1039_v0  ;;  %217 = vst.msk [vmem:[#allocation3] sm:$0xff] (!%p211_p1), %vm215_vm0, %v1039_v0 }
  0x1d   : > { %s207_s12 = scalar_lea.vmem %s1343_s0, %s839_s9 }
  0x22 PF: > { %vm230_vm1 = vcmask 1045504   ;;  %v1040_v1 = vmov 0.0   ;;  %v939_v2 = vld [vmem:[%s207_s12] sm:$0x3f]   ;;  %vm1041_vm2 = vmmov 0   ;;  %vm226_vm3 = vcmask 97280  }
  0x23   : > { %842 = vmatprep.subr.bf16.mxu0 %v1040_v1  ;;  %844 = vmatprep.mubr.msk.bf16.mxu0 %vm1041_vm2, %v1040_v1  ;;  %v232_v3 = vsel %vm230_vm1, %v939_v2, 0  ;;  %v218_v4 = vld [vmem:[%s1344_s1] sm:$0xf]  ;;  %p833_p2 = scmp.ne.s32.totalorder %s1025_s19, 0 }
  0x24   : > { %843 = vmatpush3.bf16.msra.mxu0 %v232_v3  ;;  %vm279_vm4 = vcmask (!%p833_p2), 785408   ;;  %vm293_vm5 = vcmask (!%p833_p2), 130048   ;;  %v1042_v13 = vmov (!%p833_p2), 0.0   ;;  %v278_v14 = vld [vmem:[#allocation2] sm:$0xff] (!%p833_p2)  ;;  %vm284_vm6 = vcmask (!%p833_p2), 7168   ;;  %v286_v17 = vld [vmem:[#allocation3] sm:$0xff] (!%p833_p2) }
  0x25   : > { %294 = vst.msk [vmem:[%s1164_s13] sm:$0xff] (!%p833_p2), %vm293_vm5, %v1042_v13 }
  0x27   : > { %845 = vmatmul.mubr.msk.bf16.vlgmr.msra.gmra.mrb[0].mxu0 %vm226_vm3, %v218_v4 }
  0xf7   : > { %277 = sbr.rel (%p833_p2) target bundleno = 403 (0x193), region = 44 }
  0xfa   : > { %v268_v5 = vpop.f32.mrb[0].mxu0 }
  0xfb   : > { %v274_v6 = vmax.f32 %v268_v5, 0.0  ;;  %v846_v7 = vpop.f32.mrb[1].mxu0 }
  0xfc   : > { %v271_v8 = vpop.f32.mrb[2].mxu0 }
  0xfd   : > { %v847_v9 = vpop.f32.mrb[3].mxu0  ;;  %v287_v10 = vmul.f32 (!%p833_p2), %v274_v6, %v274_v6  ;;  %v280_v11 = vsel (!%p833_p2), %vm279_vm4, %v274_v6, 0.0 }
  0xfe   : > { %281 = vadd.xlane.f32.xlu0 %v280_v11 }
  0xff   : > { %v288_v12 = vsel %vm279_vm4, %v287_v10, 0.0 }
 0x102   : > { %289 = vadd.xlane.f32.xlu0 %v288_v12 }
 0x18b   : > { %v282_v15 = vpop.xlane.xlu0 %281 }
 0x18c   : > { %v283_v16 = vadd.f32 %v282_v15, %v278_v14 }
 0x18e   : > { %285 = vst.msk [vmem:[#allocation2] sm:$0xff] %vm284_vm6, %v283_v16 }
 0x18f   : > { %v290_v18 = vpop.xlane.xlu0 %289 }
 0x190   : > { %v291_v19 = vadd.f32 %v290_v18, %v286_v17 }
 0x192   : > { %292 = vst.msk [vmem:[#allocation3] sm:$0xff] %vm284_vm6, %v291_v19 }
 0x193 PF: > { %p834_p4 = scmp.ne.s32.totalorder %s1025_s19, 1 }
 0x194   : > { %v1043_v22 = vmov (!%p834_p4), 0   ;;  %v306_v29 = vld [vmem:[%s1345_s2] sm:$0xff] (!%p834_p4)  ;;  %s1044_s7 = smov (!%p834_p4), 104   ;;  %s1045_s8 = smov (!%p834_p4), 120   ;;  %v1055_v40 = vmov (!%p834_p4), 1983009808   ;;  %v364_v42 = vlaneseq (!%p834_p4) }
 0x195   : > { %298 = sbr.rel (%p834_p4) target bundleno = 863 (0x35f), region = 48  ;;  %v299_v20 = vld [vmem:[#allocation2] sm:$0xff] (!%p834_p4)  ;;  %940 = vset.pattern.permute.xlu0 (!%p834_p4), %v1043_v22  ;;  %s1046_s9 = smov (!%p834_p4), 88   ;;  %v362_v41 = vunpack.c.l.s4 (!%p834_p4), %v1055_v40  ;;  %v1056_v48 = vmov (!%p834_p4), 1934713408   ;;  %vm563_vm7 = vcmask (!%p834_p4), 62464  }
 0x196   : > { %v300_v23 = vmul.f32 (!%p834_p4), 0.0052083335, %v299_v20  ;;  %v310_v32 = vld [vmem:[%s1346_s3] sm:$0xff] (!%p834_p4)  ;;  %s1047_s10 = smov (!%p834_p4), 112   ;;  %s1048_s11 = smov (!%p834_p4), 72   ;;  %v365_v45 = vshrl.u32 (!%p834_p4), %v364_v42, 7  ;;  %v426_v49 = vunpack.c.l.s4 (!%p834_p4), %v1056_v48 }
 0x197   : > { %s1049_s12 = smov (!%p834_p4), 96   ;;  %s1050_s14 = smov (!%p834_p4), 56   ;;  %v363_v44 = vunpack.c.0.s8 (!%p834_p4), %v362_v41  ;;  %vm620_vm8 = vcmask (!%p834_p4), 64518   ;;  %vm702_vm9 = vcmask (!%p834_p4), 1041409   ;;  %vm704_vm10 = vcmask (!%p834_p4), 1042434  }
 0x198   : > { %v303_v25 = vmul.f32 (!%p834_p4), %v300_v23, %v300_v23  ;;  %s1051_s23 = smov (!%p834_p4), 80   ;;  %s1052_s24 = smov (!%p834_p4), 40   ;;  %v427_v57 = vunpack.c.0.s8 (!%p834_p4), %v426_v49  ;;  %vm706_vm11 = vcmask (!%p834_p4), 1043459   ;;  %vm708_vm12 = vcmask (!%p834_p4), 1044484  }
 0x199   : > { %v301_v21 = vld [vmem:[#allocation3] sm:$0xff] (!%p834_p4)  ;;  %s1053_s27 = smov (!%p834_p4), 64   ;;  %s1054_s28 = smov (!%p834_p4), 48   ;;  %v1178_v51 = vsub.s32 (!%p834_p4), %v363_v44, %v365_v45  ;;  %vm622_vm13 = vcmask (!%p834_p4), 60416   ;;  %vm710_vm14 = vcmask (!%p834_p4), 1045509   ;;  %vm712_vm15 = vcmask (!%p834_p4), 1046534  }
 0x19a   : > { %v302_v24 = vmul.f32 (!%p834_p4), 0.0052083335, %v301_v21  ;;  %v1184_v3 = vsub.s32 (!%p834_p4), %v427_v57, %v365_v45  ;;  %vm714_vm0 = vcmask (!%p834_p4), 1047559   ;;  %s1058_s19 = smov (!%p834_p4), 8   ;;  %vm735_vm1 = vcmask (!%p834_p4), 64512  }
 0x19b   : > { %vm737_vm2 = vcmask (!%p834_p4), 130048  }
 0x19c   : > { %v304_v26 = vsub.f32 %v302_v24, %v303_v25 }
 0x19e   : > { %v305_v27 = vmax.f32 %v304_v26, 0.0 }
 0x1a0   : > { %v307_v28 = vadd.f32 1e-05, %v305_v27 }
 0x1a2   : > { %941 = vrsqrt.f32 %v307_v28 }
 0x1ac   : > { %v942_v30 = vpop.eup %941 }
 0x1ad   : > { %v309_v31 = vmul.f32 %v942_v30, %v306_v29 }
 0x1af   : > { %315 = vperm.xlu0 %940, %v309_v31   ;;  %v311_v33 = vmul.f32 %v309_v31, %v300_v23 }
 0x1b1   : > { %v312_v34 = vsub.f32 %v310_v32, %v311_v33 }
 0x1b3   : > { %321 = vperm.xlu0 %940, %v312_v34  }
 0x22e   : > { %v316_v35 = vpop.permute.xlu0 %315 }
 0x22f   : > { %v318_v36 = vmul.f32 %v316_v35, %v274_v6 }
 0x232   : > { %v322_v37 = vpop.permute.xlu0 %321 }
 0x233   : > { %v324_v38 = vadd.f32 %v322_v37, %v318_v36 }
 0x235   : > { %332 = vrot.lane.b32.xlu0 %v324_v38, %s1044_s7  ;;  %326 = vrot.lane.b32.xlu1 %v324_v38, %s1045_s8 }
 0x239   : > { %338 = vrot.lane.b32.xlu0 %v324_v38, %s1046_s9  ;;  %329 = vrot.lane.b32.xlu1 %v324_v38, %s1047_s10 }
 0x23d   : > { %344 = vrot.lane.b32.xlu0 %v324_v38, %s1048_s11  ;;  %335 = vrot.lane.b32.xlu1 %v324_v38, %s1049_s12 }
 0x241   : > { %350 = vrot.lane.b32.xlu0 %v324_v38, %s1050_s14  ;;  %341 = vrot.lane.b32.xlu1 %v324_v38, %s1051_s23 }
 0x245   : > { %356 = vrot.lane.b32.xlu0 %v324_v38, %s1052_s24  ;;  %347 = vrot.lane.b32.xlu1 %v324_v38, %s1053_s27 }
 0x249   : > { %353 = vrot.lane.b32.xlu1 %v324_v38, %s1054_s28 }
 0x2a7   : > { %v333_v39 = vpop.permute.xlu0 %332  ;;  %v327_v43 = vpop.permute.xlu1 %326 }
 0x2a8   : > { %v375_v52 = vcombine.low %v327_v43, %v333_v39  ;;  %v376_v56 = vcombine.high %v327_v43, %v333_v39 }
 0x2aa   : > { %v383_v61 = vrot.slane %v375_v52, %v1178_v51  ;;  %v390_v2 = vrot.slane %v376_v56, %v1178_v51 }
 0x2ab   : > { %v339_v46 = vpop.permute.xlu0 %338  ;;  %v330_v47 = vpop.permute.xlu1 %329 }
 0x2ac   : > { %v359_v50 = vcombine.low %v324_v38, %v330_v47  ;;  %v360_v53 = vcombine.high %v324_v38, %v330_v47 }
 0x2ae   : > { %v367_v58 = vrot.slane %v359_v50, %v1178_v51  ;;  %v374_v62 = vrot.slane %v360_v53, %v1178_v51 }
 0x2af   : > { %v345_v54 = vpop.permute.xlu0 %344  ;;  %v336_v55 = vpop.permute.xlu1 %335 }
 0x2b0   : > { %v407_v59 = vcombine.low %v339_v46, %v345_v54  ;;  %v408_v60 = vcombine.high %v339_v46, %v345_v54  ;;  %v423_v4 = vcombine.low %v367_v58, %v383_v61  ;;  %v424_v5 = vcombine.high %v367_v58, %v383_v61 }
 0x2b1   : > { %v439_v10 = vcombine.low %v374_v62, %v390_v2  ;;  %v440_v11 = vcombine.high %v374_v62, %v390_v2 }
 0x2b2   : > { %v415_v6 = vrot.slane %v407_v59, %v1178_v51  ;;  %v422_v7 = vrot.slane %v408_v60, %v1178_v51  ;;  %v431_v16 = vrot.slane %v423_v4, %v1184_v3  ;;  %v438_v17 = vrot.slane %v424_v5, %v1184_v3 }
 0x2b3   : > { %v342_v63 = vpop.permute.xlu1 %341  ;;  %v1192_v18 = vpop.permute.xlu0 %350  ;;  %v447_v23 = vrot.slane %v439_v10, %v1184_v3  ;;  %v454_v24 = vrot.slane %v440_v11, %v1184_v3 }
 0x2b4   : > { %v391_v0 = vcombine.low %v336_v55, %v342_v63  ;;  %v392_v1 = vcombine.high %v336_v55, %v342_v63 }
 0x2b6   : > { %v399_v8 = vrot.slane %v391_v0, %v1178_v51  ;;  %v406_v9 = vrot.slane %v392_v1, %v1178_v51 }
 0x2b7   : > { %v357_v40 = vpop.permute.xlu0 %356  ;;  %v348_v54 = vpop.permute.xlu1 %347 }
 0x2b8   : > { %v455_v12 = vcombine.low %v399_v8, %v415_v6  ;;  %v456_v13 = vcombine.high %v399_v8, %v415_v6  ;;  %v471_v14 = vcombine.low %v406_v9, %v422_v7  ;;  %v472_v15 = vcombine.high %v406_v9, %v422_v7 }
 0x2b9   : > { %v511_v53 = vcombine.low %v1192_v18, %v357_v40  ;;  %v512_v62 = vcombine.high %v1192_v18, %v357_v40 }
 0x2ba   : > { %v463_v19 = vrot.slane %v455_v12, %v1184_v3  ;;  %v470_v20 = vrot.slane %v456_v13, %v1184_v3  ;;  %v479_v21 = vrot.slane %v471_v14, %v1184_v3  ;;  %v486_v22 = vrot.slane %v472_v15, %v1184_v3 }
 0x2bb   : > { %v519_v12 = vrot.slane %v511_v53, %v1178_v51  ;;  %v526_v13 = vrot.slane %v512_v62, %v1178_v51  ;;  %v354_v14 = vpop.permute.xlu1 %353 }
 0x2bc   : > { %v1200_v25 = vcombine.low %v431_v16, %v463_v19  ;;  %v488_v26 = vcombine.high %v431_v16, %v463_v19  ;;  %v1202_v27 = vcombine.low %v438_v17, %v470_v20  ;;  %v490_v28 = vcombine.high %v438_v17, %v470_v20 }
 0x2bd   : > { %v1204_v29 = vcombine.low %v447_v23, %v479_v21  ;;  %v492_v30 = vcombine.high %v447_v23, %v479_v21  ;;  %v1206_v31 = vcombine.low %v454_v24, %v486_v22  ;;  %v494_v41 = vcombine.high %v454_v24, %v486_v22 }
 0x2be   : > { %v564_v32 = vsel %vm563_vm7, %v1200_v25, -inf  ;;  %v571_v33 = vsel %vm563_vm7, %v488_v26, -inf  ;;  %v578_v34 = vsel %vm563_vm7, %v1202_v27, -inf  ;;  %v585_v35 = vsel %vm563_vm7, %v490_v28, -inf }
 0x2bf   : > { %v565_v36 = vrot.slane %v564_v32, 4  ;;  %v572_v37 = vrot.slane %v571_v33, 4  ;;  %v579_v38 = vrot.slane %v578_v34, 4  ;;  %v586_v39 = vrot.slane %v585_v35, 4 }
 0x2c0   : > { %v592_v42 = vsel %vm563_vm7, %v1204_v29, -inf  ;;  %v599_v43 = vsel %vm563_vm7, %v492_v30, -inf  ;;  %v606_v44 = vsel %vm563_vm7, %v1206_v31, -inf  ;;  %v613_v61 = vsel %vm563_vm7, %v494_v41, -inf }
 0x2c1   : > { %v566_v45 = vmax.f32 %v564_v32, %v565_v36  ;;  %v573_v46 = vmax.f32 %v571_v33, %v572_v37  ;;  %v580_v47 = vmax.f32 %v578_v34, %v579_v38  ;;  %v587_v48 = vmax.f32 %v585_v35, %v586_v39 }
 0x2c2   : > { %v593_v49 = vrot.slane %v592_v42, 4  ;;  %v600_v50 = vrot.slane %v599_v43, 4  ;;  %v607_v52 = vrot.slane %v606_v44, 4  ;;  %v614_v11 = vrot.slane %v613_v61, 4 }
 0x2c3   : > { %v567_v55 = vrot.slane %v566_v45, 2  ;;  %v574_v56 = vrot.slane %v573_v46, 2  ;;  %v581_v57 = vrot.slane %v580_v47, 2  ;;  %v588_v58 = vrot.slane %v587_v48, 2 }
 0x2c4   : > { %v594_v59 = vmax.f32 %v592_v42, %v593_v49  ;;  %v601_v60 = vmax.f32 %v599_v43, %v600_v50  ;;  %v608_v9 = vmax.f32 %v606_v44, %v607_v52  ;;  %v631_v18 = vsel %vm620_vm8, %v488_v26, -inf }
 0x2c5   : > { %v568_v63 = vmax.f32 %v566_v45, %v567_v55  ;;  %v575_v0 = vmax.f32 %v573_v46, %v574_v56  ;;  %v582_v1 = vmax.f32 %v580_v47, %v581_v57  ;;  %v589_v2 = vmax.f32 %v587_v48, %v588_v58 }
 0x2c6   : > { %v595_v4 = vrot.slane %v594_v59, 2  ;;  %v602_v5 = vrot.slane %v601_v60, 2  ;;  %v649_v21 = vsel %vm620_vm8, %v490_v28, -inf  ;;  %v667_v22 = vsel %vm620_vm8, %v492_v30, -inf }
 0x2c7   : > { %v569_v6 = vrot.slane %v568_v63, 1  ;;  %v576_v7 = vrot.slane %v575_v0, 1  ;;  %v583_v8 = vrot.slane %v582_v1, 1  ;;  %v590_v17 = vrot.slane %v589_v2, 1 }
 0x2c8   : > { %v596_v10 = vmax.f32 %v594_v59, %v595_v4  ;;  %v1225_v20 = vmax.f32 %v601_v60, %v602_v5  ;;  %v1230_v23 = vsel %vm620_vm8, %v494_v41, -inf  ;;  %v495_v24 = vcombine.low %v348_v54, %v354_v14 }
 0x2c9   : > { %v570_v15 = vmax.f32 %v568_v63, %v569_v6  ;;  %v577_v16 = vmax.f32 %v575_v0, %v576_v7  ;;  %v584_v19 = vmax.f32 %v582_v1, %v583_v8  ;;  %v496_v32 = vcombine.high %v348_v54, %v354_v14 }
 0x2ca   : > { %v609_v33 = vrot.slane %v608_v9, 2  ;;  %v597_v34 = vrot.slane %v596_v10, 1  ;;  %v621_v35 = vsel %vm620_vm8, %v1200_v25, -inf  ;;  %v615_v36 = vmax.f32 %v613_v61, %v614_v11 }
 0x2cb   : > { %v703_v26 = vsel %vm702_vm9, %v577_v16, %v570_v15  ;;  %v591_v37 = vmax.f32 %v589_v2, %v590_v17  ;;  %v640_v38 = vsel %vm620_vm8, %v1202_v27, -inf  ;;  %v503_v28 = vrot.slane %v495_v24, %v1178_v51 }
 0x2cc   : > { %v510_v30 = vrot.slane %v496_v32, %v1178_v51  ;;  %v658_v39 = vsel %vm620_vm8, %v1204_v29, -inf  ;;  %v1241_v40 = vmax.f32 %v608_v9, %v609_v33  ;;  %v616_v41 = vrot.slane %v615_v36, 2 }
 0x2cd   : > { %v705_v42 = vsel %vm704_vm10, %v584_v19, %v703_v26  ;;  %v527_v25 = vcombine.low %v503_v28, %v519_v12  ;;  %v528_v43 = vcombine.high %v503_v28, %v519_v12  ;;  %v676_v46 = vsel %vm620_vm8, %v1206_v31, -inf }
 0x2ce   : > { %v543_v44 = vcombine.low %v510_v30, %v526_v13  ;;  %v544_v45 = vcombine.high %v510_v30, %v526_v13  ;;  %v598_v27 = vmax.f32 %v596_v10, %v597_v34  ;;  %v1246_v47 = vmax.f32 %v615_v36, %v616_v41 }
 0x2cf   : > { %v707_v51 = vsel %vm706_vm11, %v591_v37, %v705_v42  ;;  %v535_v48 = vrot.slane %v527_v25, %v1184_v3  ;;  %v542_v29 = vrot.slane %v528_v43, %v1184_v3  ;;  %v604_v52 = vrot.slane %v1225_v20, 1 }
 0x2d0   : > { %v551_v49 = vrot.slane %v543_v44, %v1184_v3  ;;  %v558_v50 = vrot.slane %v544_v45, %v1184_v3  ;;  %v611_v53 = vrot.slane %v1241_v40, 1  ;;  %v618_v54 = vrot.slane %v1246_v47, 1 }
 0x2d1   : > { %v1257_v31 = vsel %vm708_vm12, %v598_v27, %v707_v51  ;;  %v1057_v55 = vmov 0.0   ;;  %v623_v60 = vsel %vm622_vm13, %v535_v48, -inf  ;;  %v641_v61 = vsel %vm622_vm13, %v542_v29, -inf }
 0x2d2   : > { %v559_v56 = vcombine.high %v535_v48, %v1057_v55  ;;  %v560_v57 = vcombine.high %v542_v29, %v1057_v55  ;;  %v561_v58 = vcombine.high %v551_v49, %v1057_v55  ;;  %v562_v59 = vcombine.high %v558_v50, %v1057_v55 }
 0x2d3   : > { %v659_v3 = vsel %vm622_vm13, %v551_v49, -inf  ;;  %v677_v62 = vsel %vm622_vm13, %v558_v50, -inf  ;;  %v624_v63 = vmax.f32 %v621_v35, %v623_v60  ;;  %v642_v1 = vmax.f32 %v640_v38, %v641_v61 }
 0x2d4   : > { %v632_v0 = vsel %vm622_vm13, %v559_v56, -inf  ;;  %v650_v2 = vsel %vm622_vm13, %v560_v57, -inf  ;;  %v660_v6 = vmax.f32 %v658_v39, %v659_v3  ;;  %v668_v7 = vsel %vm622_vm13, %v561_v58, -inf }
 0x2d5   : > { %v633_v4 = vmax.f32 %v631_v18, %v632_v0  ;;  %v651_v5 = vmax.f32 %v649_v21, %v650_v2  ;;  %v625_v8 = vrot.slane %v624_v63, 4  ;;  %v643_v9 = vrot.slane %v642_v1, 4 }
 0x2d6   : > { %v669_v10 = vmax.f32 %v667_v22, %v668_v7  ;;  %v678_v11 = vmax.f32 %v676_v46, %v677_v62  ;;  %v661_v14 = vrot.slane %v660_v6, 4  ;;  %v686_v15 = vsel %vm622_vm13, %v562_v59, -inf }
 0x2d7   : > { %v634_v12 = vrot.slane %v633_v4, 4  ;;  %v652_v13 = vrot.slane %v651_v5, 4  ;;  %v626_v16 = vmax.f32 %v624_v63, %v625_v8  ;;  %v644_v17 = vmax.f32 %v642_v1, %v643_v9 }
 0x2d8   : > { %v670_v19 = vrot.slane %v669_v10, 4  ;;  %v679_v24 = vrot.slane %v678_v11, 4  ;;  %v662_v21 = vmax.f32 %v660_v6, %v661_v14  ;;  %v687_v33 = vmax.f32 %v1230_v23, %v686_v15 }
 0x2d9   : > { %v635_v32 = vmax.f32 %v633_v4, %v634_v12  ;;  %v653_v18 = vmax.f32 %v651_v5, %v652_v13  ;;  %v627_v34 = vrot.slane %v626_v16, 2  ;;  %v645_v35 = vrot.slane %v644_v17, 2 }
 0x2da   : > { %v671_v36 = vmax.f32 %v669_v10, %v670_v19  ;;  %v680_v22 = vmax.f32 %v678_v11, %v679_v24  ;;  %v663_v38 = vrot.slane %v662_v21, 2  ;;  %v688_v28 = vrot.slane %v687_v33, 4 }
 0x2db   : > { %v636_v26 = vrot.slane %v635_v32, 2  ;;  %v654_v37 = vrot.slane %v653_v18, 2  ;;  %v628_v30 = vmax.f32 %v626_v16, %v627_v34  ;;  %v646_v39 = vmax.f32 %v644_v17, %v645_v35 }
 0x2dc   : > { %v672_v41 = vrot.slane %v671_v36, 2  ;;  %v681_v42 = vrot.slane %v680_v22, 2  ;;  %v664_v44 = vmax.f32 %v662_v21, %v663_v38  ;;  %v689_v45 = vmax.f32 %v687_v33, %v688_v28 }
 0x2dd   : > { %v637_v25 = vmax.f32 %v635_v32, %v636_v26  ;;  %v655_v43 = vmax.f32 %v653_v18, %v654_v37  ;;  %v629_v46 = vrot.slane %v628_v30, 1  ;;  %v647_v27 = vrot.slane %v646_v39, 1 }
 0x2de   : > { %v673_v51 = vmax.f32 %v671_v36, %v672_v41  ;;  %v682_v23 = vmax.f32 %v680_v22, %v681_v42  ;;  %v690_v49 = vrot.slane %v689_v45, 2  ;;  %v665_v50 = vrot.slane %v664_v44, 1 }
 0x2df   : > { %v638_v48 = vrot.slane %v637_v25, 1  ;;  %v656_v29 = vrot.slane %v655_v43, 1  ;;  %v605_v55 = vmax.f32 %v1225_v20, %v604_v52  ;;  %v612_v56 = vmax.f32 %v1241_v40, %v611_v53 }
 0x2e0   : > { %v630_v57 = vmax.f32 %v628_v30, %v629_v46  ;;  %v674_v59 = vrot.slane %v673_v51, 1  ;;  %v691_v60 = vmax.f32 %v689_v45, %v690_v49  ;;  %v648_v61 = vmax.f32 %v646_v39, %v647_v27 }
 0x2e1   : > { %v639_v58 = vmax.f32 %v637_v25, %v638_v48  ;;  %v683_v3 = vrot.slane %v682_v23, 1  ;;  %v619_v62 = vmax.f32 %v1246_v47, %v618_v54  ;;  %v711_v63 = vsel %vm710_vm14, %v605_v55, %v1257_v31 }
 0x2e2   : > { %v657_v0 = vmax.f32 %v655_v43, %v656_v29  ;;  %v692_v1 = vrot.slane %v691_v60, 1  ;;  %v713_v52 = vsel %vm712_vm15, %v612_v56, %v711_v63  ;;  %v666_v40 = vmax.f32 %v664_v44, %v665_v50 }
 0x2e3   : > { %v725_v20 = vsel %vm702_vm9, %v639_v58, %v630_v57  ;;  %v715_v2 = vsel %vm714_vm0, %v619_v62, %v713_v52  ;;  %v675_v4 = vmax.f32 %v673_v51, %v674_v59  ;;  %v684_v6 = vmax.f32 %v682_v23, %v683_v3 }
 0x2e4   : > { %v726_v53 = vsel %vm704_vm10, %v648_v61, %v725_v20  ;;  %v693_v54 = vmax.f32 %v691_v60, %v692_v1 }
 0x2e5   : > { %v727_v5 = vsel %vm706_vm11, %v657_v0, %v726_v53 }
 0x2e6   : > { %v728_v47 = vsel %vm708_vm12, %v666_v40, %v727_v5 }
 0x2e7   : > { %v729_v31 = vsel %vm710_vm14, %v675_v4, %v728_v47 }
 0x2e8   : > { %v730_v7 = vsel %vm712_vm15, %v684_v6, %v729_v31 }
 0x2e9   : > { %v731_v8 = vsel %vm714_vm0, %v693_v54, %v730_v7 }
 0x2ea   : > { %732 = vrot.lane.b32.xlu1 %v731_v8, %s1058_s19 }
 0x35c   : > { %v733_v9 = vpop.permute.xlu1 %732 }
 0x35d   : > { %v736_v10 = vsel %vm735_vm1, %v715_v2, %v733_v9 }
 0x35e   : > { %738 = vst.msk [vmem:[%s1164_s13] sm:$0xff] %vm737_vm2, %v736_v10 }
 0x35f PF: > { %s836_s7 = sshll.u32 %s1021_s18, 7  ;;  %s753_s11 = sshll.u32 %s1164_s13, 4  ;;  %s754_s11 = int_to_ptr.vmem [resolvable:$true] %s753_s11 }
 0x360   : > { %s1293_s10 = scalar_lea.hbm %s1347_s4, %s836_s7  ;;  %s740_s12 = scalar_lea.sflag [#allocation5], %s200_s6 }
 0x361   : > { %s943_s14 = scalar_lea.vmem %s754_s11, 128  ;;  %s1059_s23 = smov [#allocation4]  }
 0x362   : > { %p944_p5 = scmp.ne.s32.totalorder %s754_s11, %s943_s14  ;;  %s947_s24 = sshll.u32 %s1059_s23, 4  ;;  %s948_s24 = int_to_ptr.vmem [resolvable:$false] %s947_s24 }
 0x363   : > { %s949_s27 = scalar_lea.vmem %s948_s24, 256  ;;  %p950_p9 = scmp.lt.s32.totalorder %s754_s11, %s948_s24 }
 0x364   : > { %p945_p6 = pnand %p944_p5, %p1137_p3  ;;  %p951_p10 = scmp.lt.s32.totalorder %s949_s27, %s943_s14 }
 0x366   : > { %p946_p7 = pneg %p945_p6  ;;  %p952_p11 = por %p951_p10, %p950_p9 }
 0x368   : > { %p953_p12 = pnand %p952_p11, %p946_p7 }
 0x36a   : > { %956 = shalt.err (!%p953_p12)
}
 0x36b   : > { %s957_s18 = scalar_lea.hbm %s1293_s10, 128  ;;  %s961_s28 = scalar_lea.hbm %s1347_s4, 256 }
 0x36c   : > { %p958_p13 = scmp.ne.s32.totalorder %s1293_s10, %s957_s18  ;;  %p962_p2 = scmp.lt.u32.totalorder %s1293_s10, %s1347_s4 }
 0x36d   : > { %p963_p4 = scmp.lt.u32.totalorder %s961_s28, %s957_s18  ;;  %p965_p6 = scmp.lt.u32.totalorder %s957_s18, %s1293_s10 }
 0x36e   : > { %p959_p0 = pnand %p958_p13, %p1137_p3 }
 0x36f   : > { %p964_p5 = por %p963_p4, %p962_p2 }
 0x370   : > { %p960_p1 = pneg %p959_p0 }
 0x371   : > { %p966_p7 = por %p965_p6, %p964_p5 }
 0x373   : > { %p967_p9 = pnand %p966_p7, %p960_p1 }
 0x375   : > { %970 = shalt.err (!%p967_p9)
}
 0x376   : > { %848 = dma.vmem_to_hbm [thread:$0]  (%p1137_p3), %s754_s11, 128, %s1293_s10, %s740_s12  }
 0x377 PF: > { %p854_p10 = scmp.ge.s32.totalorder %s1037_s22, 2  ;;  %s765_s8 = sand.u32 1, %s1009_s15  }
 0x378   : > { %s766_s9 = scalar_lea.sflag [#allocation5], %s765_s8 }
 0x379   : > { %p851_p11 = pnand %p854_p10, %p1148_p8 }
 0x37b   : > { %1004 = dma.done.wait (!%p851_p11), %s766_s9, 128  }
 0x37c   : > { %1006 = vsyncadd (!%p851_p11), %s766_s9, 4294967168  ;;  %s17_s22 = sadd.s32 1, %s1037_s22   ;;  %s1350_s15 = smov %s1013_s16 }
 0x37d   : > { %p14_p12 = scmp.ge.s32.totalorder %s17_s22, 6   ;;  %s1351_s16 = smov %s1017_s17 }
 0x37e   : > { %s1352_s17 = smov %s1146_s30  ;;  %s1353_s18 = smov %s1029_s20 }
 0x37f   : > { %s1354_s19 = smov %s1033_s21  ;;  %s1355_s20 = smov %s1358_s25 }
 0x380   : > { %s1356_s21 = smov %s1362_s26  ;;  %16 = sbr.rel (!%p14_p12) target bundleno = 5 (0x5), region = 83 }
 0x387   :  { %771 = vsyncpa [#allocation5], 1 }
 0x388   :  { %773 = vsyncpa [#allocation5 + $0x1], 1 }

</bundles_post_ra>
